<compile_context>
chip_gen: v6e
topology: v6e:2x2x1
jax: 0.10.0
libtpu: 0.0.40
codegen_flags: <defaults>
</compile_context>

<pallas_src>
import functools

import jax
import jax.numpy as jnp
from jax.experimental import pallas as pl
from jax.experimental.pallas import tpu as pltpu

_LANE = 128
_SUBLANE = 8


def _round_up(n, m):
    return ((n + m - 1) // m) * m


def _cdiv(a, b):
    return (a + b - 1) // b


def _pad2d(a, rows, cols):
    return jnp.pad(a, ((0, rows - a.shape[0]), (0, cols - a.shape[1])))


def prepare_params(params, *, use_bf16=True):
    """One-time padding / casting of Pi parameters for the Pallas kernel.

    Only the *output* feature dims of the two hidden layers are zero-padded to
    a 128-lane multiple (exact: padded bias cols are 0, relu(0)=0, and the
    matching padded contraction rows of the next weight are 0).  The state
    dim (layer-1 contraction) and the action dim (final output) are left
    unpadded.  With use_bf16=True the matmul operands are cast to bf16 --
    MXU-native on v5e, v6e and v7x -- while biases stay f32 and accumulation
    is f32 in-kernel.  Call this ONCE per parameter set, outside the hot path.
    """
    w1, b1 = params["w1"], params["b1"]
    w2, b2 = params["w2"], params["b2"]
    w3, b3 = params["w3"], params["b3"]
    S, H1 = w1.shape
    H2, A = w3.shape
    H1p = _round_up(H1, _LANE)
    H2p = _round_up(H2, _LANE)
    mm_dtype = jnp.bfloat16 if use_bf16 else jnp.float32
    return {
        "w1": _pad2d(w1, S, H1p).astype(mm_dtype),
        "b1": _pad2d(b1, 1, H1p),
        "w2": _pad2d(w2, H1p, H2p).astype(mm_dtype),
        "b2": _pad2d(b2, 1, H2p),
        "w3": _pad2d(w3, H2p, A).astype(mm_dtype),
        "b3": b3,
    }


def _pi_kernel(x_ref, w1_ref, b1_ref, w2_ref, b2_ref, w3_ref, b3_ref, o_ref,
               *, action_limit):
    # Matmul operands take the (possibly bf16) weight dtype; bias add / ReLU /
    # tanh stay f32 (v5e VPU/EUP have no bf16), accumulation is always f32.
    mm_dtype = w1_ref.dtype
    x = x_ref[...]
    h1 = jnp.dot(x.astype(mm_dtype), w1_ref[...],
                 preferred_element_type=jnp.float32) + b1_ref[...]
    h1 = jnp.maximum(h1, 0.0)
    h2 = jnp.dot(h1.astype(mm_dtype), w2_ref[...],
                 preferred_element_type=jnp.float32) + b2_ref[...]
    h2 = jnp.maximum(h2, 0.0)
    out = jnp.dot(h2.astype(mm_dtype), w3_ref[...],
                  preferred_element_type=jnp.float32) + b3_ref[...]
    o_ref[...] = (jnp.tanh(out) * action_limit).astype(o_ref.dtype)


def _choose_tb(batch, cap=1024):
    """Batch tile: sublane multiple, capped, >=2 grid steps when splittable."""
    if batch <= _SUBLANE:
        return batch                      # single block; full-dim block is legal
    # Aim for at least 2 grid steps so v7x's two TensorCores both get work.
    return min(cap, _round_up(_cdiv(batch, 2), _SUBLANE))


@functools.partial(jax.jit, static_argnames=("action_limit",))
def pi_forward(x, padded_params, *, action_limit):
    """Pi actor forward pass as a single batch-gridded Pallas kernel.

    x: (B, state_dims) float32.
    padded_params: output of `prepare_params` (padded/cast once, reused).
    Returns: (B, action_dims) float32.
    """
    w1, b1 = padded_params["w1"], padded_params["b1"]
    w2, b2 = padded_params["w2"], padded_params["b2"]
    w3, b3 = padded_params["w3"], padded_params["b3"]

    B, S = x.shape
    H1p = w1.shape[1]
    H2p = w2.shape[1]
    A = w3.shape[1]

    TB = _choose_tb(B)
    grid = (_cdiv(B, TB),)                # ragged last block is masked by Pallas

    kernel = functools.partial(_pi_kernel, action_limit=float(action_limit))

    weight_bytes = sum(int(a.size) * a.dtype.itemsize
                       for a in (w1, w2, w3, b1, b2, b3))
    cost = pl.CostEstimate(
        flops=2 * B * (S * H1p + H1p * H2p + H2p * A),
        transcendentals=B * A,
        bytes_accessed=B * S * x.dtype.itemsize + B * A * 4 + weight_bytes,
    )

    const = lambda i: (0, 0)   # weights/biases: same block every step -> resident
    return pl.pallas_call(
        kernel,
        out_shape=jax.ShapeDtypeStruct((B, A), jnp.float32),
        grid=grid,
        in_specs=[
            pl.BlockSpec((TB, S), lambda i: (i, 0)),    # x tile (unpadded S)
            pl.BlockSpec((S, H1p), const),              # w1
            pl.BlockSpec((1, H1p), const),              # b1
            pl.BlockSpec((H1p, H2p), const),            # w2
            pl.BlockSpec((1, H2p), const),              # b2
            pl.BlockSpec((H2p, A), const),              # w3 (unpadded A)
            pl.BlockSpec((1, A), const),                # b3 (unpadded A)
        ],
        out_specs=pl.BlockSpec((TB, A), lambda i: (i, 0)),
        compiler_params=pltpu.CompilerParams(
            dimension_semantics=("parallel",),          # batch grid -> megacore
        ),
        cost_estimate=cost,
    )(x, w1, b1, w2, b2, w3, b3)


def init_params(key, state_dims, hidden_dims, action_dims):
    """Deterministic parameter init (PyTorch-Linear-like uniform fan-in)."""
    assert len(hidden_dims) == 2
    dims = [state_dims, hidden_dims[0], hidden_dims[1], action_dims]
    params = {}
    keys = jax.random.split(key, 6)
    for i, (din, dout) in enumerate(zip(dims[:-1], dims[1:])):
        bound = 1.0 / (din ** 0.5)
        w = jax.random.uniform(keys[2 * i], (din, dout), jnp.float32, -bound, bound)
        b = jax.random.uniform(keys[2 * i + 1], (1, dout), jnp.float32, -bound, bound)
        params[f"w{i + 1}"] = w
        params[f"b{i + 1}"] = b
    return params


def pi_forward_ref(x, params, action_limit):
    """Pure-JAX reference for correctness checking."""
    h1 = jnp.maximum(x @ params["w1"] + params["b1"], 0.0)
    h2 = jnp.maximum(h1 @ params["w2"] + params["b2"], 0.0)
    return jnp.tanh(h2 @ params["w3"] + params["b3"]) * action_limit


# TODO(synk): torch .save()/.load() checkpoint I/O from the original module is
# host-side state management with no Pallas equivalent; not implemented here.

if __name__ == "__main__":
    key = jax.random.PRNGKey(0)
    k_x, k_p, k_x2 = jax.random.split(key, 3)

    batch = 2
    state_dims = 8
    hidden_dims = (32, 32)
    action_dims = 4
    action_limit = 2.0

    x = jax.random.normal(k_x, (batch, state_dims), dtype=jnp.float32)
    params = init_params(k_p, state_dims, hidden_dims, action_dims)
    ref = pi_forward_ref(x, params, action_limit)

    # Exact (f32-matmul) path.
    pp_f32 = prepare_params(params, use_bf16=False)
    out_f32 = jax.block_until_ready(
        pi_forward(x, pp_f32, action_limit=action_limit))
    assert out_f32.shape == (batch, action_dims)
    assert jnp.allclose(out_f32, ref, atol=1e-5, rtol=1e-5)

    # bf16-operand / f32-accumulate MXU path (all TPU generations).
    pp_bf16 = prepare_params(params, use_bf16=True)
    out_bf16 = jax.block_until_ready(
        pi_forward(x, pp_bf16, action_limit=action_limit))
    assert out_bf16.shape == (batch, action_dims)
    assert jnp.allclose(out_bf16, ref, atol=3e-2, rtol=3e-2)

    # Larger batch that is not a multiple of the tile: exercises the cdiv grid
    # with a ragged (masked) last block and >=2 grid steps.
    x_big = jax.random.normal(k_x2, (300, state_dims), dtype=jnp.float32)
    ref_big = pi_forward_ref(x_big, params, action_limit)
    out_big = jax.block_until_ready(
        pi_forward(x_big, pp_f32, action_limit=action_limit))
    assert out_big.shape == (300, action_dims)
    assert jnp.allclose(out_big, ref_big, atol=1e-5, rtol=1e-5)

    print("KERNEL_OK")
</pallas_src>

<mosaic_0001>
module attributes {stable_mosaic.version = 11 : i64} {
  func.func @_pi_kernel(%arg0: i32, %arg1: memref<2x8xf32, #tpu.memory_space<vmem>>, %arg2: memref<8x128xf32, #tpu.memory_space<vmem>>, %arg3: memref<1x128xf32, #tpu.memory_space<vmem>>, %arg4: memref<128x128xf32, #tpu.memory_space<vmem>>, %arg5: memref<1x128xf32, #tpu.memory_space<vmem>>, %arg6: memref<128x4xf32, #tpu.memory_space<vmem>>, %arg7: memref<1x4xf32, #tpu.memory_space<vmem>>, %arg8: memref<2x4xf32, #tpu.memory_space<vmem>>) attributes {dimension_semantics = [#tpu.dimension_semantics<parallel>], iteration_bounds = array<i64: 1>, scalar_prefetch = 0 : i64, scratch_operands = 0 : i64, tpu.core_type = #tpu.core_type<tc>, window_params = [{transform_indices = @transform_0, window_bounds = array<i64: 2, 8>}, {pipeline_mode = #tpu.pipeline_mode<synchronous>, transform_indices = @transform_1, window_bounds = array<i64: 8, 128>}, {pipeline_mode = #tpu.pipeline_mode<synchronous>, transform_indices = @transform_2, window_bounds = array<i64: 1, 128>}, {pipeline_mode = #tpu.pipeline_mode<synchronous>, transform_indices = @transform_3, window_bounds = array<i64: 128, 128>}, {pipeline_mode = #tpu.pipeline_mode<synchronous>, transform_indices = @transform_4, window_bounds = array<i64: 1, 128>}, {pipeline_mode = #tpu.pipeline_mode<synchronous>, transform_indices = @transform_5, window_bounds = array<i64: 128, 4>}, {pipeline_mode = #tpu.pipeline_mode<synchronous>, transform_indices = @transform_6, window_bounds = array<i64: 1, 4>}, {transform_indices = @transform_7, window_bounds = array<i64: 2, 4>}]} {
    %c0 = arith.constant 0 : index
    %c0_0 = arith.constant 0 : index
    %0 = vector.load %arg1[%c0, %c0_0] : memref<2x8xf32, #tpu.memory_space<vmem>>, vector<2x8xf32>
    %c0_1 = arith.constant 0 : index
    %c0_2 = arith.constant 0 : index
    %1 = vector.load %arg2[%c0_1, %c0_2] : memref<8x128xf32, #tpu.memory_space<vmem>>, vector<8x128xf32>
    %cst = arith.constant dense<0.000000e+00> : vector<2x128xf32>
    %2 = tpu.matmul %0, %1, %cst {dimension_numbers = #tpu.dot_dimension_numbers<[1], [0], [0], [1], [0, 0, 1, 1], [], []>} : vector<2x8xf32>, vector<8x128xf32>, vector<2x128xf32> -> vector<2x128xf32>
    %c0_3 = arith.constant 0 : index
    %c0_4 = arith.constant 0 : index
    %3 = vector.load %arg3[%c0_3, %c0_4] : memref<1x128xf32, #tpu.memory_space<vmem>>, vector<1x128xf32>
    %4 = vector.broadcast %3 : vector<1x128xf32> to vector<2x128xf32>
    %5 = arith.addf %2, %4 : vector<2x128xf32>
    %cst_5 = arith.constant 0.000000e+00 : f32
    %6 = vector.broadcast %cst_5 : f32 to vector<2x128xf32>
    %7 = arith.maximumf %5, %6 : vector<2x128xf32>
    %c0_6 = arith.constant 0 : index
    %c0_7 = arith.constant 0 : index
    %8 = vector.load %arg4[%c0_6, %c0_7] : memref<128x128xf32, #tpu.memory_space<vmem>>, vector<128x128xf32>
    %cst_8 = arith.constant dense<0.000000e+00> : vector<2x128xf32>
    %9 = tpu.matmul %7, %8, %cst_8 {dimension_numbers = #tpu.dot_dimension_numbers<[1], [0], [0], [1], [0, 0, 1, 1], [], []>} : vector<2x128xf32>, vector<128x128xf32>, vector<2x128xf32> -> vector<2x128xf32>
    %c0_9 = arith.constant 0 : index
    %c0_10 = arith.constant 0 : index
    %10 = vector.load %arg5[%c0_9, %c0_10] : memref<1x128xf32, #tpu.memory_space<vmem>>, vector<1x128xf32>
    %11 = vector.broadcast %10 : vector<1x128xf32> to vector<2x128xf32>
    %12 = arith.addf %9, %11 : vector<2x128xf32>
    %cst_11 = arith.constant 0.000000e+00 : f32
    %13 = vector.broadcast %cst_11 : f32 to vector<2x128xf32>
    %14 = arith.maximumf %12, %13 : vector<2x128xf32>
    %c0_12 = arith.constant 0 : index
    %c0_13 = arith.constant 0 : index
    %15 = vector.load %arg6[%c0_12, %c0_13] : memref<128x4xf32, #tpu.memory_space<vmem>>, vector<128x4xf32>
    %cst_14 = arith.constant dense<0.000000e+00> : vector<2x4xf32>
    %16 = tpu.matmul %14, %15, %cst_14 {dimension_numbers = #tpu.dot_dimension_numbers<[1], [0], [0], [1], [0, 0, 1, 1], [], []>} : vector<2x128xf32>, vector<128x4xf32>, vector<2x4xf32> -> vector<2x4xf32>
    %c0_15 = arith.constant 0 : index
    %c0_16 = arith.constant 0 : index
    %17 = vector.load %arg7[%c0_15, %c0_16] : memref<1x4xf32, #tpu.memory_space<vmem>>, vector<1x4xf32>
    %18 = vector.broadcast %17 : vector<1x4xf32> to vector<2x4xf32>
    %19 = arith.addf %16, %18 : vector<2x4xf32>
    %20 = math.tanh %19 : vector<2x4xf32>
    %cst_17 = arith.constant 2.000000e+00 : f32
    %21 = vector.broadcast %cst_17 : f32 to vector<2x4xf32>
    %22 = arith.mulf %20, %21 : vector<2x4xf32>
    %c0_18 = arith.constant 0 : index
    %c0_19 = arith.constant 0 : index
    %23 = vector.load %arg8[%c0_18, %c0_19] : memref<2x4xf32, #tpu.memory_space<vmem>>, vector<2x4xf32>
    tpu.vector_store %arg8[%c0_18, %c0_19], %22 {strides = array<i32>} : memref<2x4xf32, #tpu.memory_space<vmem>>, vector<2x4xf32>,
    return
  }
  func.func @transform_0(%arg0: i32) -> (i32, i32) {
    %c0_i32 = arith.constant 0 : i32
    %c0_i32_0 = arith.constant 0 : i32
    return %arg0, %c0_i32 : i32, i32
  }
  func.func @transform_1(%arg0: i32) -> (i32, i32) {
    %c0_i32 = arith.constant 0 : i32
    %c0_i32_0 = arith.constant 0 : i32
    %c0_i32_1 = arith.constant 0 : i32
    return %c0_i32, %c0_i32_0 : i32, i32
  }
  func.func @transform_2(%arg0: i32) -> (i32, i32) {
    %c0_i32 = arith.constant 0 : i32
    %c0_i32_0 = arith.constant 0 : i32
    %c0_i32_1 = arith.constant 0 : i32
    return %c0_i32, %c0_i32_0 : i32, i32
  }
  func.func @transform_3(%arg0: i32) -> (i32, i32) {
    %c0_i32 = arith.constant 0 : i32
    %c0_i32_0 = arith.constant 0 : i32
    %c0_i32_1 = arith.constant 0 : i32
    return %c0_i32, %c0_i32_0 : i32, i32
  }
  func.func @transform_4(%arg0: i32) -> (i32, i32) {
    %c0_i32 = arith.constant 0 : i32
    %c0_i32_0 = arith.constant 0 : i32
    %c0_i32_1 = arith.constant 0 : i32
    return %c0_i32, %c0_i32_0 : i32, i32
  }
  func.func @transform_5(%arg0: i32) -> (i32, i32) {
    %c0_i32 = arith.constant 0 : i32
    %c0_i32_0 = arith.constant 0 : i32
    %c0_i32_1 = arith.constant 0 : i32
    return %c0_i32, %c0_i32_0 : i32, i32
  }
  func.func @transform_6(%arg0: i32) -> (i32, i32) {
    %c0_i32 = arith.constant 0 : i32
    %c0_i32_0 = arith.constant 0 : i32
    %c0_i32_1 = arith.constant 0 : i32
    return %c0_i32, %c0_i32_0 : i32, i32
  }
  func.func @transform_7(%arg0: i32) -> (i32, i32) {
    %c0_i32 = arith.constant 0 : i32
    %c0_i32_0 = arith.constant 0 : i32
    return %arg0, %c0_i32 : i32, i32
  }
}

</mosaic_0001>

<bundles_post_ra>
// kernel: pi_forward.1
= control target key start
LH: loop header
LB: loop body
LE: loop exit
PB: predicated region body
PF: predicated region fallthrough
CT: control target
= control target key end

     0   :  { %12 = vsyncpa [#allocation3], 0  ;;  %s761_s0 = inlined_call_operand.vmem [shape: f32[2,8], index: 0, kind: input, shape index: {}]   ;;  %s762_s1 = inlined_call_operand.vmem [shape: f32[8,128], index: 1, kind: input, shape index: {}]   ;;  %s763_s2 = inlined_call_operand.hbm [shape: f32[1,128], index: 2, kind: input, shape index: {}]   ;;  %s764_s3 = inlined_call_operand.vmem [shape: f32[128,128], index: 3, kind: input, shape index: {}]   ;;  %s765_s4 = inlined_call_operand.hbm [shape: f32[1,128], index: 4, kind: input, shape index: {}]   ;;  %s766_s5 = inlined_call_operand.vmem [shape: f32[128,4], index: 5, kind: input, shape index: {}]   ;;  %s767_s6 = inlined_call_operand.hbm [shape: f32[1,4], index: 6, kind: input, shape index: {}]   ;;  %s768_s7 = inlined_call_operand.hbm [shape: f32[2,4], index: 7, kind: output, shape index: {}]  }
   0x1   :  { %13 = vsyncpa [#allocation6], 0 }
   0x2   :  { %14 = vsyncpa [#allocation4], 0  ;;  %s562_s24 = smov [#allocation5]   ;;  %s563_s26 = smov [#allocation2]  }
   0x3   :  { %s37_s25 = sshll.u32 %s562_s24, 4  ;;  %s25_s27 = sshll.u32 %s563_s26, 4  ;;  %s38_s25 = int_to_ptr.vmem [resolvable:$true] %s37_s25  ;;  %s26_s27 = int_to_ptr.vmem [resolvable:$true] %s25_s27 }
   0x4   :  { %s484_s28 = scalar_lea.vmem %s38_s25, 16  ;;  %s488_s29 = scalar_lea.vmem %s38_s25, 32 }
   0x5   :  { %p485_p0 = scmp.ne.s32.totalorder %s38_s25, %s484_s28  ;;  %p489_p1 = scmp.lt.s32.totalorder %s38_s25, %s38_s25 }
   0x6   :  { %p490_p2 = scmp.lt.s32.totalorder %s488_s29, %s484_s28 }
   0x8   :  { %p491_p3 = por %p490_p2, %p489_p1 }
   0xa   :  { %p492_p4 = pnand %p491_p3, %p485_p0 }
   0xc   :  { %495 = shalt.err (!%p492_p4)
}
   0xd   :  { %40 = dma.hbm_to_vmem [thread:$0]  %s765_s4, 16, %s38_s25, [#allocation6]  }
   0xe   :  { %s504_s9 = scalar_lea.vmem %s26_s27, 16  ;;  %s508_s10 = scalar_lea.vmem %s26_s27, 32 }
   0xf   :  { %p505_p5 = scmp.ne.s32.totalorder %s26_s27, %s504_s9  ;;  %p509_p6 = scmp.lt.s32.totalorder %s26_s27, %s26_s27 }
  0x10   :  { %p510_p7 = scmp.lt.s32.totalorder %s508_s10, %s504_s9 }
  0x12   :  { %p511_p8 = por %p510_p7, %p509_p6 }
  0x14   :  { %p512_p9 = pnand %p511_p8, %p505_p5 }
  0x16   :  { %515 = shalt.err (!%p512_p9)
}
  0x17   :  { %28 = dma.hbm_to_vmem [thread:$0]  %s763_s2, 16, %s26_s27, [#allocation3]  }
  0x18   :  { %s564_s13 = smov [#allocation7]  }
  0x19   :  { %s49_s14 = sshll.u32 %s564_s13, 4  ;;  %s50_s14 = int_to_ptr.vmem [resolvable:$true] %s49_s14 }
  0x1a   :  { %s524_s15 = scalar_lea.vmem %s50_s14, 16  ;;  %s528_s16 = scalar_lea.vmem %s50_s14, 32 }
  0x1b   :  { %p525_p10 = scmp.ne.s32.totalorder %s50_s14, %s524_s15  ;;  %p529_p11 = scmp.lt.s32.totalorder %s50_s14, %s50_s14 }
  0x1c   :  { %p530_p12 = scmp.lt.s32.totalorder %s528_s16, %s524_s15 }
  0x1e   :  { %p531_p13 = por %p530_p12, %p529_p11 }
  0x20   :  { %p532_p0 = pnand %p531_p13, %p525_p10 }
  0x22   :  { %535 = shalt.err (!%p532_p0)
}
  0x23   :  { %52 = dma.hbm_to_vmem [thread:$0]  %s767_s6, 16, %s50_s14, [#allocation6]  }
  0x24   :  { %556 = dma.done.wait [#allocation3], 16  }
  0x25   :  { %557 = vsyncadd [#allocation3], 4294967280 }
  0x26   :  { %558 = dma.done.wait [#allocation6], 32  }
  0x27   :  { %559 = vsyncadd [#allocation6], 4294967264  ;;  %v565_v0 = vmov 0.0   ;;  %vm566_vm0 = vmmov 0   ;;  %vm71_vm1 = vcmask 64512   ;;  %v63_v1 = vld [vmem:[%s762_s1] sm:$0xff] }
  0x28   :  { %393 = vmatprep.subr.mxu0 %v565_v0  ;;  %395 = vmatprep.mubr.msk.f32.mxu0 %vm566_vm0, %v565_v0  ;;  %v62_v2 = vld [vmem:[%s761_s0] sm:$0x3]  ;;  %v161_v3 = vld [vmem:[%s764_s3 + $0x78] sm:$0xff]  ;;  %v160_v4 = vld [vmem:[%s764_s3 + $0x70] sm:$0xff]  ;;  %s567_s1 = smov [#allocation8]   ;;  %vm335_vm2 = vcmask 25600  }
  0x29   :  { %398 = vmatprep.subr.mxu1 %v565_v0  ;;  %430 = vmatprep.mubr.msk.f32.mxu1 %vm566_vm0, %v565_v0  ;;  %v159_v5 = vld [vmem:[%s764_s3 + $0x68] sm:$0xff]  ;;  %v158_v6 = vld [vmem:[%s764_s3 + $0x60] sm:$0xff]  ;;  %v157_v7 = vld [vmem:[%s764_s3 + $0x58] sm:$0xff]  ;;  %s343_s26 = sshll.u32 %s567_s1, 4  ;;  %s344_s26 = int_to_ptr.vmem [resolvable:$true] %s343_s26 }
  0x2a   :  { %394 = vmatpush3.msra.mxu0 %v63_v1  ;;  %399 = vmatpush3.msra.mxu1 %v161_v3  ;;  %v156_v8 = vld [vmem:[%s764_s3 + $0x50] sm:$0xff]  ;;  %v155_v9 = vld [vmem:[%s764_s3 + $0x48] sm:$0xff]  ;;  %v154_v10 = vld [vmem:[%s764_s3 + $0x40] sm:$0xff]  ;;  %p541_p2 = scmp.lt.s32.totalorder %s344_s26, %s344_s26 }
  0x2b   :  { %396 = vmatmul.mubr.msk.f32.vlgmr.msra.gmra.mxu0 %vm71_vm1, %v62_v2  ;;  %400 = vmatprep.subr.mxu1 %v565_v0  ;;  %v153_v11 = vld [vmem:[%s764_s3 + $0x38] sm:$0xff]  ;;  %v152_v12 = vld [vmem:[%s764_s3 + $0x30] sm:$0xff]  ;;  %v151_v13 = vld [vmem:[%s764_s3 + $0x28] sm:$0xff] }
  0x2c   :  { %401 = vmatpush3.msra.mxu1 %v160_v4  ;;  %433 = vmatprep.subr.mxu0 %v565_v0  ;;  %v150_v14 = vld [vmem:[%s764_s3 + $0x20] sm:$0xff]  ;;  %v149_v15 = vld [vmem:[%s764_s3 + $0x18] sm:$0xff]  ;;  %v148_v16 = vld [vmem:[%s764_s3 + $0x10] sm:$0xff] }
  0x2d   :  { %402 = vmatprep.subr.mxu1 %v565_v0  ;;  %465 = vmatprep.mubr.msk.f32.mxu0 %vm566_vm0, %v565_v0  ;;  %v147_v17 = vld [vmem:[%s764_s3 + $0x8] sm:$0xff]  ;;  %v146_v18 = vld [vmem:[%s764_s3] sm:$0xff]  ;;  %v255_v19 = vld [vmem:[%s766_s5 + $0x78] sm:$0xff] }
  0x2e   :  { %403 = vmatpush3.msra.mxu1 %v159_v5  ;;  %v254_v20 = vld [vmem:[%s766_s5 + $0x70] sm:$0xff]  ;;  %434 = vmatpush3.msra.mxu0 %v255_v19  ;;  %v253_v21 = vld [vmem:[%s766_s5 + $0x68] sm:$0xff]  ;;  %v252_v22 = vld [vmem:[%s766_s5 + $0x60] sm:$0xff] }
  0x2f   :  { %404 = vmatprep.subr.mxu1 %v565_v0  ;;  %435 = vmatprep.subr.mxu0 %v565_v0  ;;  %v251_v23 = vld [vmem:[%s766_s5 + $0x58] sm:$0xff]  ;;  %v250_v24 = vld [vmem:[%s766_s5 + $0x50] sm:$0xff]  ;;  %v249_v25 = vld [vmem:[%s766_s5 + $0x48] sm:$0xff] }
  0x30   :  { %405 = vmatpush3.msra.mxu1 %v158_v6  ;;  %436 = vmatpush3.msra.mxu0 %v254_v20  ;;  %v248_v26 = vld [vmem:[%s766_s5 + $0x40] sm:$0xff]  ;;  %v247_v27 = vld [vmem:[%s766_s5 + $0x38] sm:$0xff]  ;;  %v246_v28 = vld [vmem:[%s766_s5 + $0x30] sm:$0xff] }
  0x31   :  { %406 = vmatprep.subr.mxu1 %v565_v0  ;;  %437 = vmatprep.subr.mxu0 %v565_v0  ;;  %v245_v29 = vld [vmem:[%s766_s5 + $0x28] sm:$0xff]  ;;  %v244_v30 = vld [vmem:[%s766_s5 + $0x20] sm:$0xff]  ;;  %v243_v31 = vld [vmem:[%s766_s5 + $0x18] sm:$0xff] }
  0x32   :  { %407 = vmatpush3.msra.mxu1 %v157_v7  ;;  %438 = vmatpush3.msra.mxu0 %v253_v21  ;;  %v353_v32 = vld [vmem:[#allocation2] ss:$0 sm:$0xff]  ;;  %v242_v37 = vld [vmem:[%s766_s5 + $0x10] sm:$0xff]  ;;  %v241_v38 = vld [vmem:[%s766_s5 + $0x8] sm:$0xff] }
  0x33   :  { %408 = vmatprep.subr.mxu1 %v565_v0  ;;  %439 = vmatprep.subr.mxu0 %v565_v0  ;;  %v240_v39 = vld [vmem:[%s766_s5] sm:$0xff]  ;;  %s536_s5 = scalar_lea.vmem %s344_s26, 32 }
  0x34   :  { %409 = vmatpush3.msra.mxu1 %v156_v8  ;;  %440 = vmatpush3.msra.mxu0 %v252_v22  ;;  %v355_v40 = vld [vmem:[#allocation5] ss:$0 sm:$0xff]  ;;  %v356_v45 = vld [vmem:[#allocation7] ss:$0 sm:$0xff]  ;;  %p537_p1 = scmp.ne.s32.totalorder %s344_s26, %s536_s5  ;;  %p542_p3 = scmp.lt.s32.totalorder %s536_s5, %s536_s5 }
  0x35   :  { %410 = vmatprep.subr.mxu1 %v565_v0  ;;  %441 = vmatprep.subr.mxu0 %v565_v0 }
  0x36   :  { %411 = vmatpush3.msra.mxu1 %v155_v9  ;;  %442 = vmatpush3.msra.mxu0 %v251_v23  ;;  %p543_p4 = por %p542_p3, %p541_p2 }
  0x37   :  { %412 = vmatprep.subr.mxu1 %v565_v0  ;;  %443 = vmatprep.subr.mxu0 %v565_v0 }
  0x38   :  { %413 = vmatpush3.msra.mxu1 %v154_v10  ;;  %444 = vmatpush3.msra.mxu0 %v250_v24  ;;  %p544_p5 = pnand %p543_p4, %p537_p1 }
  0x39   :  { %414 = vmatprep.subr.mxu1 %v565_v0  ;;  %445 = vmatprep.subr.mxu0 %v565_v0 }
  0x3a   :  { %415 = vmatpush3.msra.mxu1 %v153_v11  ;;  %446 = vmatpush3.msra.mxu0 %v249_v25 }
  0x3b   :  { %416 = vmatprep.subr.mxu1 %v565_v0  ;;  %447 = vmatprep.subr.mxu0 %v565_v0 }
  0x3c   :  { %417 = vmatpush3.msra.mxu1 %v152_v12  ;;  %448 = vmatpush3.msra.mxu0 %v248_v26 }
  0x3d   :  { %418 = vmatprep.subr.mxu1 %v565_v0  ;;  %449 = vmatprep.subr.mxu0 %v565_v0 }
  0x3e   :  { %419 = vmatpush3.msra.mxu1 %v151_v13  ;;  %450 = vmatpush3.msra.mxu0 %v247_v27 }
  0x3f   :  { %420 = vmatprep.subr.mxu1 %v565_v0  ;;  %451 = vmatprep.subr.mxu0 %v565_v0 }
  0x40   :  { %421 = vmatpush3.msra.mxu1 %v150_v14  ;;  %452 = vmatpush3.msra.mxu0 %v246_v28 }
  0x41   :  { %422 = vmatprep.subr.mxu1 %v565_v0  ;;  %453 = vmatprep.subr.mxu0 %v565_v0 }
  0x42   :  { %423 = vmatpush3.msra.mxu1 %v149_v15  ;;  %454 = vmatpush3.msra.mxu0 %v245_v29 }
  0x43   :  { %424 = vmatprep.subr.mxu1 %v565_v0  ;;  %455 = vmatprep.subr.mxu0 %v565_v0 }
  0x44   :  { %425 = vmatpush3.msra.mxu1 %v148_v16  ;;  %456 = vmatpush3.msra.mxu0 %v244_v30 }
  0x45   :  { %426 = vmatprep.subr.mxu1 %v565_v0  ;;  %457 = vmatprep.subr.mxu0 %v565_v0 }
  0x46   :  { %427 = vmatpush3.msra.mxu1 %v147_v17  ;;  %458 = vmatpush3.msra.mxu0 %v243_v31 }
  0x47   :  { %428 = vmatprep.subr.mxu1 %v565_v0  ;;  %459 = vmatprep.subr.mxu0 %v565_v0 }
  0x48   :  { %429 = vmatpush3.msra.mxu1 %v146_v18  ;;  %460 = vmatpush3.msra.mxu0 %v242_v37 }
  0x49   :  { %461 = vmatprep.subr.mxu0 %v565_v0 }
  0x4a   :  { %462 = vmatpush3.msra.mxu0 %v241_v38 }
  0x4b   :  { %463 = vmatprep.subr.mxu0 %v565_v0 }
  0x4c   :  { %464 = vmatpush3.msra.mxu0 %v240_v39 }
  0xeb   :  { %v141_v33 = vpop.f32.mrf.mxu0 }
  0xec   :  { %v142_v34 = vadd.f32 %v353_v32, %v141_v33 }
  0xed   :  { %v397_v35 = vpop.f32.mrf.mxu0 }
  0xee   :  { %v145_v36 = vmax.f32 %v142_v34, 0.0 }
  0xf0   :  { %431 = vmatmul.mubr.f32.vlgmr.msra.gmra.mxu1 %v145_v36 }
 0x1b0   :  { %v235_v41 = vpop.f32.mrf.mxu1 }
 0x1b1   :  { %v236_v42 = vadd.f32 %v355_v40, %v235_v41 }
 0x1b2   :  { %v432_v43 = vpop.f32.mrf.mxu1 }
 0x1b3   :  { %v239_v44 = vmax.f32 %v236_v42, 0.0 }
 0x1b5   :  { %466 = vmatmul.mubr.f32.vlgmr.msra.gmra.mxu0 %v239_v44 }
 0x275   :  { %v329_v46 = vpop.f32.mrf.mxu0 }
 0x276   :  { %v330_v47 = vadd.f32 %v356_v45, %v329_v46 }
 0x277   :  { %v467_v48 = vpop.f32.mrf.mxu0 }
 0x278   :  { %474 = vtanh.f32 %v330_v47 }
 0x285   :  { %v475_v49 = vpop.eup %474 }
 0x286   :  { %v334_v50 = vmul.f32 2.0, %v475_v49 }
 0x288   :  { %336 = vst.msk [vmem:[#allocation8] sm:$0x3] %vm335_vm2, %v334_v50 }
 0x289   :  { %547 = shalt.err (!%p544_p5)
}
 0x28a   :  { %346 = dma.vmem_to_hbm [thread:$0]  %s344_s26, 32, %s768_s7, [#allocation4]  }
 0x28b   :  { %560 = dma.done.wait [#allocation4], 32  }
 0x28c   :  { %561 = vsyncadd [#allocation4], 4294967264 }
 0x28d   :  { %350 = vsyncpa [#allocation3], 1 }
 0x28e   :  { %351 = vsyncpa [#allocation6], 1 }
 0x28f   :  { %352 = vsyncpa [#allocation4], 1 }

</bundles_post_ra>
